<compile_context>
chip_gen: v7x
topology: tpu7x:2x2x1
jax: 0.10.0
libtpu: 0.0.40
codegen_flags: <defaults>
</compile_context>

<pallas_src>
import jax
import jax.numpy as jnp
from jax.experimental import pallas as pl
from jax.experimental.pallas import tpu as pltpu


def _round_up(a: int, b: int) -> int:
    return (a + b - 1) // b * b


def _cdiv(a: int, b: int) -> int:
    return (a + b - 1) // b


def listnet_kernel(x_ref, w1_ref, b1_ref, w2_ref, b2_ref, o_ref):
    # Layer 1 on the MXU: `fold` logical rows are packed along the lane dim of
    # each x row; w1_ref holds the matching block-diagonal (fold*F, fold*H) bf16
    # weights.  x arrives in its HBM dtype and is cast to bf16 here.
    x = x_ref[...].astype(jnp.bfloat16)
    h = jnp.dot(x, w1_ref[...], preferred_element_type=jnp.float32)
    h = jnp.maximum(h + b1_ref[...], 0.0)                 # bias + ReLU in f32 (v5e-safe)
    # Layer 2: block-structured (fold*H, fold) selector -> one logit per packed row.
    logits = jnp.dot(h, w2_ref[...], preferred_element_type=jnp.float32)
    o_ref[...] = (logits + b2_ref[0, 0]).astype(o_ref.dtype)   # b2 from SMEM scalar


def listnet_forward(x, w1, b1, w2, b2, *, block_rows: int = 32768):
    """ListNet forward: relu(x @ w1 + b1) @ w2 + b2.

    x: (N, F) f32; w1: (F, H); b1: (H,); w2: (H,); b2: scalar.  Returns (N, 1) f32.
    """
    n, f = x.shape
    h_dim = w1.shape[1]

    # ---- Row fold: pack `fold` rows into the 128-lane dim (free reshape). ----
    fold = max(1, 128 // f)
    n_pad = _round_up(n, fold)
    x_in = x if n_pad == n else jnp.pad(x, ((0, n_pad - n), (0, 0)))  # tiny copy only if N % fold
    n_fold = n_pad // fold
    x_fold = x_in.reshape(n_fold, fold * f)            # contiguous row-major reshape: no copy

    # ---- Folded parameters (tiny; precompute/cache once in a real pipeline). ----
    f32 = jnp.float32
    eye = jnp.eye(fold, dtype=f32)
    w1_bd = jnp.kron(eye, w1.astype(f32)).astype(jnp.bfloat16)        # (fold*F, fold*H)
    b1_t = jnp.tile(b1.astype(f32).reshape(1, h_dim), (1, fold))      # (1, fold*H)
    w2_sel = jnp.kron(eye, w2.astype(f32).reshape(h_dim, 1))          # (fold*H, fold)
    b2_s = jnp.asarray(b2, f32).reshape(1, 1)                         # SMEM scalar

    # ---- Tile choice (in folded rows). ----
    # Big enough to amortize the ~0.35us/step pipeline overhead (>=128 KiB of x
    # per step), small enough to double-buffer comfortably in VMEM, and >= ~8
    # grid steps for large N so v7x's two TensorCores both get work.
    max_tile = max(8, block_rows // fold)              # default: 4096 folded rows (~2 MiB of x)
    if n_fold <= 256:
        tm = n_fold                                    # single tile == full array dims (always legal)
    else:
        tm = _round_up(_cdiv(n_fold, 8), 8)            # aim for ~8 grid steps
        tm = max(256, min(tm, max_tile))
    num_tiles = _cdiv(n_fold, tm)                      # ragged last tile: Pallas pads reads, masks writes

    cost = pl.CostEstimate(
        flops=2 * n_fold * (fold * f) * (fold * h_dim)
        + 2 * n_fold * (fold * h_dim) * fold,
        transcendentals=0,
        bytes_accessed=int(x_fold.size) * x_fold.dtype.itemsize
        + n_fold * fold * 4
        + int(w1_bd.size) * 2 + int(b1_t.size) * 4 + int(w2_sel.size) * 4 + 4,
    )

    out = pl.pallas_call(
        listnet_kernel,
        out_shape=jax.ShapeDtypeStruct((n_fold, fold), jnp.float32),
        grid=(num_tiles,),
        in_specs=[
            pl.BlockSpec((tm, fold * f), lambda i: (i, 0)),            # x: streamed per tile
            pl.BlockSpec((fold * f, fold * h_dim), lambda i: (0, 0)),  # block-diag w1: VMEM-resident
            pl.BlockSpec((1, fold * h_dim), lambda i: (0, 0)),         # tiled b1: VMEM-resident
            pl.BlockSpec((fold * h_dim, fold), lambda i: (0, 0)),      # w2 selector: VMEM-resident
            pl.BlockSpec(memory_space=pltpu.MemorySpace.SMEM),         # b2 scalar
        ],
        out_specs=pl.BlockSpec((tm, fold), lambda i: (i, 0)),
        compiler_params=pltpu.CompilerParams(
            dimension_semantics=("parallel",),
            vmem_limit_bytes=48 * 1024 * 1024,     # headroom for tile sweeps, safe on v7x's 64 MiB
        ),
        cost_estimate=cost,
    )(x_fold, w1_bd, b1_t, w2_sel, b2_s)

    # (n_fold, fold) row-major == logical row order; slice off the <fold padded rows.
    return out.reshape(n_pad, 1)[:n]


def init_params(key, num_input_features, hidden_dim, dtype=jnp.float32):
    """Deterministic init mimicking torch.nn.Linear's uniform(-1/sqrt(fan_in))."""
    k1, k2, k3, k4 = jax.random.split(key, 4)
    bound1 = 1.0 / (num_input_features ** 0.5)
    bound2 = 1.0 / (hidden_dim ** 0.5)
    w1 = jax.random.uniform(k1, (num_input_features, hidden_dim), dtype,
                            minval=-bound1, maxval=bound1)
    b1 = jax.random.uniform(k2, (hidden_dim,), dtype, minval=-bound1, maxval=bound1)
    w2 = jax.random.uniform(k3, (hidden_dim,), dtype, minval=-bound2, maxval=bound2)
    b2 = jax.random.uniform(k4, (), dtype, minval=-bound2, maxval=bound2)
    return w1, b1, w2, b2


def reference_forward(x, w1, b1, w2, b2):
    """Pure-JAX f32 reference of the PyTorch module's forward semantics."""
    h = jnp.maximum(x @ w1 + b1[None, :], 0.0)
    return h @ w2.reshape(-1, 1) + b2


if __name__ == "__main__":
    num_input_features = 16
    hidden_dim = 32

    key = jax.random.PRNGKey(0)
    kp, kx = jax.random.split(key, 2)
    w1, b1, w2, b2 = init_params(kp, num_input_features, hidden_dim)

    # Three cases: tiny list (single folded row), ragged N (pad to fold, single
    # full-array tile), and a multi-tile list with a ragged last grid block.
    for n in (8, 300, 2560):
        x = jax.random.normal(jax.random.fold_in(kx, n),
                              (n, num_input_features), jnp.float32)
        logits = jax.block_until_ready(listnet_forward(x, w1, b1, w2, b2))
        ref = reference_forward(x, w1, b1, w2, b2)
        assert logits.shape == (n, 1)
        err = float(jnp.max(jnp.abs(logits - ref)))
        # bf16-streaming tolerance (x / w1 are consumed by the MXU in bf16).
        assert jnp.allclose(logits, ref, atol=3e-2, rtol=3e-2), f"max err {err} at N={n}"

    print("KERNEL_OK")
</pallas_src>

<mosaic_0001>
module attributes {stable_mosaic.version = 11 : i64} {
  func.func @listnet_kernel(%arg0: i32, %arg1: memref<1x128xf32, #tpu.memory_space<vmem>>, %arg2: memref<128x256xbf16, #tpu.memory_space<vmem>>, %arg3: memref<1x256xf32, #tpu.memory_space<vmem>>, %arg4: memref<256x8xf32, #tpu.memory_space<vmem>>, %arg5: memref<1x1xf32, #tpu.memory_space<smem>>, %arg6: memref<1x8xf32, #tpu.memory_space<vmem>>) attributes {dimension_semantics = [#tpu.dimension_semantics<parallel>], iteration_bounds = array<i64: 1>, scalar_prefetch = 0 : i64, scratch_operands = 0 : i64, tpu.core_type = #tpu.core_type<tc>, window_params = [{transform_indices = @transform_0, window_bounds = array<i64: 1, 128>}, {pipeline_mode = #tpu.pipeline_mode<synchronous>, transform_indices = @transform_1, window_bounds = array<i64: 128, 256>}, {pipeline_mode = #tpu.pipeline_mode<synchronous>, transform_indices = @transform_2, window_bounds = array<i64: 1, 256>}, {pipeline_mode = #tpu.pipeline_mode<synchronous>, transform_indices = @transform_3, window_bounds = array<i64: 256, 8>}, {transform_indices = @transform_4, window_bounds = array<i64: 1, 1>}, {transform_indices = @transform_5, window_bounds = array<i64: 1, 8>}]} {
    %c0 = arith.constant 0 : index
    %c0_0 = arith.constant 0 : index
    %0 = vector.load %arg1[%c0, %c0_0] : memref<1x128xf32, #tpu.memory_space<vmem>>, vector<1x128xf32>
    %1 = arith.truncf %0 : vector<1x128xf32> to vector<1x128xbf16>
    %c0_1 = arith.constant 0 : index
    %c0_2 = arith.constant 0 : index
    %2 = vector.load %arg2[%c0_1, %c0_2] : memref<128x256xbf16, #tpu.memory_space<vmem>>, vector<128x256xbf16>
    %cst = arith.constant dense<0.000000e+00> : vector<1x256xf32>
    %3 = tpu.matmul %1, %2, %cst {dimension_numbers = #tpu.dot_dimension_numbers<[1], [0], [0], [1], [0, 0, 1, 1], [], []>} : vector<1x128xbf16>, vector<128x256xbf16>, vector<1x256xf32> -> vector<1x256xf32>
    %c0_3 = arith.constant 0 : index
    %c0_4 = arith.constant 0 : index
    %4 = vector.load %arg3[%c0_3, %c0_4] : memref<1x256xf32, #tpu.memory_space<vmem>>, vector<1x256xf32>
    %5 = arith.addf %3, %4 : vector<1x256xf32>
    %cst_5 = arith.constant 0.000000e+00 : f32
    %6 = vector.broadcast %cst_5 : f32 to vector<1x256xf32>
    %7 = arith.maximumf %5, %6 : vector<1x256xf32>
    %c0_6 = arith.constant 0 : index
    %c0_7 = arith.constant 0 : index
    %8 = vector.load %arg4[%c0_6, %c0_7] : memref<256x8xf32, #tpu.memory_space<vmem>>, vector<256x8xf32>
    %cst_8 = arith.constant dense<0.000000e+00> : vector<1x8xf32>
    %9 = tpu.matmul %7, %8, %cst_8 {dimension_numbers = #tpu.dot_dimension_numbers<[1], [0], [0], [1], [0, 0, 1, 1], [], []>} : vector<1x256xf32>, vector<256x8xf32>, vector<1x8xf32> -> vector<1x8xf32>
    %c0_9 = arith.constant 0 : index
    %c0_10 = arith.constant 0 : index
    %10 = memref.load %arg5[%c0_9, %c0_10] : memref<1x1xf32, #tpu.memory_space<smem>>
    %11 = vector.broadcast %10 : f32 to vector<1x8xf32>
    %12 = arith.addf %9, %11 : vector<1x8xf32>
    %c0_11 = arith.constant 0 : index
    %c0_12 = arith.constant 0 : index
    %13 = vector.load %arg6[%c0_11, %c0_12] : memref<1x8xf32, #tpu.memory_space<vmem>>, vector<1x8xf32>
    tpu.vector_store %arg6[%c0_11, %c0_12], %12 {strides = array<i32>} : memref<1x8xf32, #tpu.memory_space<vmem>>, vector<1x8xf32>,
    return
  }
  func.func @transform_0(%arg0: i32) -> (i32, i32) {
    %c0_i32 = arith.constant 0 : i32
    %c0_i32_0 = arith.constant 0 : i32
    return %arg0, %c0_i32 : i32, i32
  }
  func.func @transform_1(%arg0: i32) -> (i32, i32) {
    %c0_i32 = arith.constant 0 : i32
    %c0_i32_0 = arith.constant 0 : i32
    %c0_i32_1 = arith.constant 0 : i32
    return %c0_i32, %c0_i32_0 : i32, i32
  }
  func.func @transform_2(%arg0: i32) -> (i32, i32) {
    %c0_i32 = arith.constant 0 : i32
    %c0_i32_0 = arith.constant 0 : i32
    %c0_i32_1 = arith.constant 0 : i32
    return %c0_i32, %c0_i32_0 : i32, i32
  }
  func.func @transform_3(%arg0: i32) -> (i32, i32) {
    %c0_i32 = arith.constant 0 : i32
    %c0_i32_0 = arith.constant 0 : i32
    %c0_i32_1 = arith.constant 0 : i32
    return %c0_i32, %c0_i32_0 : i32, i32
  }
  func.func @transform_4(%arg0: i32) -> (i32, i32) {
    %c0_i32 = arith.constant 0 : i32
    %c0_i32_0 = arith.constant 0 : i32
    %c0_i32_1 = arith.constant 0 : i32
    return %c0_i32, %c0_i32_0 : i32, i32
  }
  func.func @transform_5(%arg0: i32) -> (i32, i32) {
    %c0_i32 = arith.constant 0 : i32
    %c0_i32_0 = arith.constant 0 : i32
    return %arg0, %c0_i32 : i32, i32
  }
}

</mosaic_0001>

<bundles_post_ra>
// kernel: tpu_custom_call.1
= control target key start
LH: loop header
LB: loop body
LE: loop exit
PB: predicated region body
PF: predicated region fallthrough
CT: control target
= control target key end

     0   :  { %v429_v2 = vmov 0   ;;  %s626_s0 = inlined_call_operand.vmem [shape: f32[1,128], index: 0, kind: input, shape index: {}]   ;;  %s627_s1 = inlined_call_operand.vmem [shape: bf16[128,256], index: 1, kind: input, shape index: {}]   ;;  %s628_s2 = inlined_call_operand.vmem [shape: f32[1,256], index: 2, kind: input, shape index: {}]   ;;  %s629_s3 = inlined_call_operand.vmem [shape: f32[256,8], index: 3, kind: input, shape index: {}]   ;;  %s630_s4 = inlined_call_operand.<no memory space> [shape: f32[1,1], index: 4, kind: input, shape index: {}]   ;;  %s631_s5 = inlined_call_operand.hbm [shape: f32[1,8], index: 5, kind: output, shape index: {}]  }
   0x1   :  { %v381_v0 = vld [vmem:[%s627_s1 + $0x4] ss:$8 sps:$4 sm:$0xff]   ;;  %v383_v1 = vld [vmem:[%s627_s1] ss:$8 sps:$4 sm:$0xff]   ;;  %165 = vmatprep.mubr.bf16.mxu0 %v429_v2  ;;  %v384_v3 = vld [vmem:[%s627_s1 + $0x14] ss:$8 sps:$4 sm:$0xff]  }
   0x2   :  { %133 = vmatprep.subr.bf16.mxu0 %v381_v0  ;;  %v386_v4 = vld [vmem:[%s627_s1 + $0x10] ss:$8 sps:$4 sm:$0xff]   ;;  %v387_v5 = vld [vmem:[%s627_s1 + $0x24] ss:$8 sps:$4 sm:$0xff]   ;;  %v389_v6 = vld [vmem:[%s627_s1 + $0x20] ss:$8 sps:$4 sm:$0xff]  }
   0x3   :  { %134 = vmatpush1.bf16.msra.mxu0 %v383_v1  ;;  %v390_v7 = vld [vmem:[%s627_s1 + $0x34] ss:$8 sps:$4 sm:$0xff]   ;;  %v392_v8 = vld [vmem:[%s627_s1 + $0x30] ss:$8 sps:$4 sm:$0xff]   ;;  %v393_v9 = vld [vmem:[%s627_s1 + $0x44] ss:$8 sps:$4 sm:$0xff]  }
   0x4   :  { %135 = vmatprep.subr.bf16.mxu0 %v384_v3  ;;  %v192_v10 = vld [vmem:[%s629_s3 + $0x80] sm:$0xff]  ;;  %v193_v11 = vld [vmem:[%s629_s3 + $0x88] sm:$0xff]  ;;  %v194_v15 = vld [vmem:[%s629_s3 + $0x90] sm:$0xff] }
   0x5   :  { %v176_v12 = vld [vmem:[%s629_s3] sm:$0xff]  ;;  %v347_v13 = vpack.c.bf16 %v193_v11, %v192_v10  ;;  %v177_v14 = vld [vmem:[%s629_s3 + $0x8] sm:$0xff]  ;;  %v195_v16 = vld [vmem:[%s629_s3 + $0x98] sm:$0xff] }
   0x6   :  { %v349_v17 = vpack.c.bf16 %v177_v14, %v176_v12  ;;  %v351_v18 = vpack.c.bf16 %v195_v16, %v194_v15  ;;  %v178_v19 = vld [vmem:[%s629_s3 + $0x10] sm:$0xff]  ;;  %v179_v20 = vld [vmem:[%s629_s3 + $0x18] sm:$0xff]  ;;  %v196_v21 = vld [vmem:[%s629_s3 + $0xa0] sm:$0xff] }
   0x7   :  { %136 = vmatpush1.bf16.msra.mxu0 %v386_v4  ;;  %348 = vmatprep.subr.bf16.mxu1 %v347_v13  ;;  %v197_v22 = vld [vmem:[%s629_s3 + $0xa8] sm:$0xff]  ;;  %v353_v24 = vpack.c.bf16 %v179_v20, %v178_v19  ;;  %v396_v25 = vld [vmem:[%s627_s1 + $0x54] ss:$8 sps:$4 sm:$0xff]   ;;  %v180_v27 = vld [vmem:[%s629_s3 + $0x20] sm:$0xff] }
   0x8   :  { %137 = vmatprep.subr.bf16.mxu0 %v387_v5  ;;  %v395_v23 = vld [vmem:[%s627_s1 + $0x40] ss:$8 sps:$4 sm:$0xff]   ;;  %350 = vmatpush3.bf16.msra.mxu1 %v349_v17  ;;  %v355_v26 = vpack.c.bf16 %v197_v22, %v196_v21  ;;  %v198_v29 = vld [vmem:[%s629_s3 + $0xb0] sm:$0xff]  ;;  %v199_v30 = vld [vmem:[%s629_s3 + $0xb8] sm:$0xff] }
   0x9   :  { %352 = vmatprep.subr.bf16.mxu1 %v351_v18  ;;  %v181_v28 = vld [vmem:[%s629_s3 + $0x28] sm:$0xff]  ;;  %v398_v31 = vld [vmem:[%s627_s1 + $0x50] ss:$8 sps:$4 sm:$0xff]   ;;  %v359_v34 = vpack.c.bf16 %v199_v30, %v198_v29 }
   0xa   :  { %v399_v32 = vld [vmem:[%s627_s1 + $0x64] ss:$8 sps:$4 sm:$0xff]   ;;  %v357_v33 = vpack.c.bf16 %v181_v28, %v180_v27  ;;  %v182_v35 = vld [vmem:[%s629_s3 + $0x30] sm:$0xff]  ;;  %v183_v36 = vld [vmem:[%s629_s3 + $0x38] sm:$0xff] }
   0xb   :  { %138 = vmatpush1.bf16.msra.mxu0 %v389_v6 }
   0xc   :  { %139 = vmatprep.subr.bf16.mxu0 %v390_v7  ;;  %354 = vmatpush3.bf16.msra.mxu1 %v353_v24 }
   0xd   :  { %356 = vmatprep.subr.bf16.mxu1 %v355_v26 }
   0xf   :  { %140 = vmatpush1.bf16.msra.mxu0 %v392_v8 }
  0x10   :  { %141 = vmatprep.subr.bf16.mxu0 %v393_v9 }
  0x13   :  { %142 = vmatpush1.bf16.msra.mxu0 %v395_v23 }
  0x14   :  { %143 = vmatprep.subr.bf16.mxu0 %v396_v25 }
  0x15   :  { %11 = vsyncpa [#allocation4], 0  ;;  %v200_v37 = vld [vmem:[%s629_s3 + $0xc0] sm:$0xff]  ;;  %v201_v38 = vld [vmem:[%s629_s3 + $0xc8] sm:$0xff]  ;;  %358 = vmatpush3.bf16.msra.mxu1 %v357_v33  ;;  %v361_v40 = vpack.c.bf16 %v183_v36, %v182_v35  ;;  %v123_v3 = vlaneseq  ;;  %v209_v19 = vstv %s630_s4  ;;  %vm280_vm0 = vcmask 57344  }
  0x16   :  { %v401_v39 = vld [vmem:[%s627_s1 + $0x60] ss:$8 sps:$4 sm:$0xff]   ;;  %v402_v41 = vld [vmem:[%s627_s1 + $0x74] ss:$8 sps:$4 sm:$0xff]   ;;  %360 = vmatprep.subr.bf16.mxu1 %v359_v34  ;;  %v363_v42 = vpack.c.bf16 %v201_v38, %v200_v37  ;;  %v404_v47 = vld [vmem:[%s627_s1 + $0x70] ss:$8 sps:$4 sm:$0xff]  }
  0x17   :  { %144 = vmatpush1.bf16.msra.mxu0 %v398_v31  ;;  %v184_v43 = vld [vmem:[%s629_s3 + $0x40] sm:$0xff]  ;;  %v185_v44 = vld [vmem:[%s629_s3 + $0x48] sm:$0xff]  ;;  %v202_v45 = vld [vmem:[%s629_s3 + $0xd0] sm:$0xff]  ;;  %v124_v4 = vshrl.u32 %v123_v3, 7 }
  0x18   :  { %145 = vmatprep.subr.bf16.mxu0 %v399_v32  ;;  %v203_v46 = vld [vmem:[%s629_s3 + $0xd8] sm:$0xff]  ;;  %v23_v48 = vld [vmem:[%s626_s0] sm:$0x1]  ;;  %v365_v49 = vpack.c.bf16 %v185_v44, %v184_v43  ;;  %v186_v51 = vld [vmem:[%s629_s3 + $0x50] sm:$0xff] }
  0x19   :  { %362 = vmatpush3.bf16.msra.mxu1 %v361_v40  ;;  %v367_v50 = vpack.c.bf16 %v203_v46, %v202_v45  ;;  %v187_v52 = vld [vmem:[%s629_s3 + $0x58] sm:$0xff]  ;;  %v204_v53 = vld [vmem:[%s629_s3 + $0xe0] sm:$0xff]  ;;  %v205_v54 = vld [vmem:[%s629_s3 + $0xe8] sm:$0xff]  ;;  %v24_v55 = vpack.c.bf16 %v23_v48, %v23_v48  ;;  %v125_v5 = vsub.s32 0, %v124_v4  ;;  %v129_v7 = vsub.s32 1, %v124_v4 }
  0x1a   :  { %364 = vmatprep.subr.bf16.mxu1 %v363_v42  ;;  %v369_v56 = vpack.c.bf16 %v187_v52, %v186_v51  ;;  %v371_v57 = vpack.c.bf16 %v205_v54, %v204_v53  ;;  %v188_v58 = vld [vmem:[%s629_s3 + $0x60] sm:$0xff]  ;;  %v189_v59 = vld [vmem:[%s629_s3 + $0x68] sm:$0xff]  ;;  %v206_v61 = vld [vmem:[%s629_s3 + $0xf0] sm:$0xff] }
  0x1b   :  { %146 = vmatpush1.bf16.msra.mxu0 %v401_v39  ;;  %v373_v60 = vpack.c.bf16 %v189_v59, %v188_v58  ;;  %v207_v62 = vld [vmem:[%s629_s3 + $0xf8] sm:$0xff]  ;;  %v190_v0 = vld [vmem:[%s629_s3 + $0x70] sm:$0xff]  ;;  %v41_v6 = vld [vmem:[%s628_s2] sm:$0x3]  ;;  %s430_s2 = smov [#allocation3]  }
  0x1c   :  { %147 = vmatprep.subr.bf16.mxu0 %v402_v41  ;;  %v375_v63 = vpack.c.bf16 %v207_v62, %v206_v61  ;;  %v191_v1 = vld [vmem:[%s629_s3 + $0x78] sm:$0xff]  ;;  %v126_v8 = vrot.slane %v41_v6, %v125_v5  ;;  %v130_v9 = vrot.slane %v41_v6, %v129_v7  ;;  %s288_s17 = sshll.u32 %s430_s2, 4  ;;  %s289_s17 = int_to_ptr.vmem [resolvable:$true] %s288_s17 }
  0x1d   :  { %366 = vmatpush3.bf16.msra.mxu1 %v365_v49  ;;  %v377_v2 = vpack.c.bf16 %v191_v1, %v190_v0  ;;  %s405_s18 = scalar_lea.vmem %s289_s17, 16  ;;  %s409_s19 = scalar_lea.vmem %s289_s17, 32 }
  0x1e   :  { %368 = vmatprep.subr.bf16.mxu1 %v367_v50  ;;  %p406_p0 = scmp.ne.s32.totalorder %s289_s17, %s405_s18  ;;  %p410_p1 = scmp.lt.s32.totalorder %s289_s17, %s289_s17 }
  0x1f   :  { %148 = vmatpush1.bf16.msra.mxu0 %v404_v47  ;;  %p411_p2 = scmp.lt.s32.totalorder %s409_s19, %s405_s18 }
  0x21   :  { %370 = vmatpush3.bf16.msra.mxu1 %v369_v56  ;;  %p412_p3 = por %p411_p2, %p410_p1 }
  0x22   :  { %166 = vmatmul.mubr.bf16.vlgmr.msra.gmra.mrb[0].mxu0 %v24_v55  ;;  %372 = vmatprep.subr.bf16.mxu1 %v371_v57 }
  0x23   :  { %p413_p4 = pnand %p412_p3, %p406_p0 }
  0x25   :  { %374 = vmatpush3.bf16.msra.mxu1 %v373_v60 }
  0x26   :  { %376 = vmatprep.subr.bf16.mxu1 %v375_v63 }
  0x29   :  { %378 = vmatpush3.bf16.msra.mxu1 %v377_v2 }
  0xf5   :  { %v167_v10 = vpop.f32.mrb[0].mxu0 }
  0xf6   :  { %v168_v11 = vadd.f32 %v167_v10, %v126_v8  ;;  %v169_v12 = vpop.f32.mrb[1].mxu0 }
  0xf7   :  { %v171_v13 = vpop.f32.mrb[2].mxu0  ;;  %v170_v14 = vadd.f32 %v169_v12, %v130_v9 }
  0xf8   :  { %v172_v15 = vpop.f32.mrb[3].mxu0  ;;  %v174_v17 = vmax.f32 %v168_v11, 0.0 }
  0xf9   :  { %v175_v16 = vmax.f32 %v170_v14, 0.0 }
  0xfb   :  { %274 = vmatprep.mubr.f32.mxu1 %v175_v16 }
  0xfc   :  { %275 = vmatmul.mubr.f32.vlgmr.msra.gmra.mrb[0].mxu1 %v174_v17 }
 0x1cf   :  { %v344_v18 = vpop.f32.mrb[0].mxu1 }
 0x1d0   :  { %v345_v20 = vpop.f32.mrb[1].mxu1 }
 0x1d1   :  { %v346_v21 = vadd.f32 %v345_v20, %v344_v18 }
 0x1d3   :  { %v277_v22 = vadd.f32 %v346_v21, %v209_v19 }
 0x1d5   :  { %281 = vst.msk [vmem:[#allocation3] sm:$0x1] %vm280_vm0, %v277_v22 }
 0x1d6   :  { %416 = shalt.err (!%p413_p4)
}
 0x1d7   :  { %s417_s4 = scalar_lea.hbm %s631_s5, 16 }
 0x1d8   :  { %p418_p5 = scmp.ne.s32.totalorder %s631_s5, %s417_s4  ;;  %p421_p6 = scmp.lt.u32.totalorder %s417_s4, %s631_s5 }
 0x1da   :  { %p423_p7 = pnand %p421_p6, %p418_p5 }
 0x1dc   :  { %426 = shalt.err (!%p423_p7)
}
 0x1dd   :  { %291 = dma.vmem_to_hbm [thread:$0]  %s289_s17, 16, %s631_s5, [#allocation4]  }
 0x1de   :  { %427 = dma.done.wait [#allocation4], 16  }
 0x1df   :  { %428 = vsyncadd [#allocation4], 4294967280 }
 0x1e0   :  { %295 = vsyncpa [#allocation4], 1 }

</bundles_post_ra>
